<compile_context>
chip_gen: v6e
topology: v6e:2x2x1
jax: 0.10.0
libtpu: 0.0.40
codegen_flags: <defaults>
</compile_context>

<pallas_src>
import functools

import jax
import jax.numpy as jnp
from jax.experimental import pallas as pl
from jax.experimental.pallas import tpu as pltpu

# ----------------------------- configuration -------------------------------
BATCH = 2
WINDOW = 8                  # window_size
HORIZON = 4                 # forecasting_horizon
D_INPUT = 4                 # features of x_past
D_FUTURE = 3                # features of x_future (unused by the flat encoder)
D_OUTPUT = 3                # d_output
D_HIDDEN = 32               # flat-encoder hidden width (logical, no padding)
HEAD_HIDDEN = 16
N_CELLS = 2
N_NODES = 2
N_CELL_INPUT_NODES = 1
PRIMITIVES_ENCODER = ("identity", "linear", "mlp")
HEADS = ("linear", "mlp")

T_TOTAL = WINDOW + HORIZON          # 12
D_DEC = T_TOTAL * D_OUTPUT          # 36
D_FLAT = WINDOW * D_INPUT           # 32 (== D_HIDDEN -> shared K=32 slab)
D_HH = T_TOTAL * HEAD_HIDDEN        # 192: block-diag MLP-head hidden width
OUT_PAD = 128                       # lane-dense padded output width (>= D_DEC)
TB = 8                              # batch tile = one f32 sublane group

assert D_FLAT == D_HIDDEN == 32, "shared K=32 weight slab assumes this"

# ------------------------ static packed-slab layout -------------------------
SEG = 128                               # every weight segment starts 128-aligned
CELL_COLS = 3 * SEG                     # cat01 | cat2 | w2_edge2
C_EMBED = 0
C_CELL0 = SEG
C_HL = C_CELL0 + N_CELLS * CELL_COLS    # 896: folded proj@linear-head
C_HM1 = C_HL + SEG                      # 1024: folded proj@mlp-head layer 1
C_PROJ = C_HM1 + 2 * SEG                # 1280: raw projection (dec mode only)
NK32 = C_PROJ + SEG                     # 1408 columns in the K=32 slab

R_EMBED = 0
R_CELL0 = 1                             # 4 bias rows per cell
R_HL = R_CELL0 + 4 * N_CELLS            # 9
R_HM1, R_HM2, R_PROJ = R_HL + 1, R_HL + 2, R_HL + 3
BIAS_ROWS = 16
BIAS_COLS = 256


def build_edges(n_nodes: int, n_inputs: int):
    """DARTS cell DAG: every intermediate node gets an edge from all previous nodes."""
    edge2index = {}
    idx = 0
    for i in range(n_nodes):
        for j in range(n_inputs + i):
            edge2index[(j, n_inputs + i)] = idx
            idx += 1
    return edge2index, idx


EDGE2INDEX, N_EDGES = build_edges(N_NODES, N_CELL_INPUT_NODES)
E01 = EDGE2INDEX[(0, 1)]
E02 = EDGE2INDEX[(0, 2)]
E12 = EDGE2INDEX[(1, 2)]


# ------------------------------ fused Pallas kernel ------------------------------
def _fused_forward_kernel(arch_ref,          # SMEM [N_EDGES, 3] arch weights
                          x_ref,             # VMEM [TB, 32]
                          wk32_ref,          # VMEM [32, 1408]  (K=32 weights)
                          wk64_ref,          # VMEM [64, 256]   (block-diag mlp.w2 of fused edges)
                          wk192_ref,         # VMEM [192, 128]  (mlp-head layer 2)
                          bias_ref,          # VMEM [16, 256]   (all biases)
                          *out_refs,         # heads: (hl, hm) / dec: (dec,)
                          mode):
    f32 = jnp.float32
    DH = D_HIDDEN

    def mm(a, b):
        return jnp.dot(a, b, preferred_element_type=f32)

    # flat (N-BEATS style) embedding of the whole lookback window
    x = x_ref[...]                                                   # (TB, 32)
    s = jnp.maximum(mm(x, wk32_ref[:, C_EMBED:C_EMBED + DH])
                    + bias_ref[R_EMBED:R_EMBED + 1, 0:DH], 0.0)

    # DARTS cells: edges (0,1) and (0,2) share the cell-input node, so their
    # linear.w / mlp.w1 are concatenated along N (one 32x128 matmul) and their
    # mlp.w2 are block-diagonalised (one 64x64 matmul).  Primitive mixing with
    # the architecture weights happens in-register from SMEM scalars.
    for c in range(N_CELLS):
        cb = C_CELL0 + c * CELL_COLS
        rb = R_CELL0 + c * 4

        # fused edges (0,1)+(0,2): [lin_e0 | lin_e1 | mlp1_e0 | mlp1_e1]
        cat01 = (mm(s, wk32_ref[:, cb:cb + SEG])
                 + bias_ref[rb:rb + 1, 0:SEG])                       # (TB, 128)
        hid01 = jnp.maximum(cat01[:, 2 * DH:4 * DH], 0.0)            # (TB, 64)
        m01 = (mm(hid01, wk64_ref[:, c * SEG:c * SEG + 2 * DH])
               + bias_ref[rb + 1:rb + 2, 0:2 * DH])                  # (TB, 64)

        node1 = (arch_ref[E01, 0] * s
                 + arch_ref[E01, 1] * cat01[:, 0:DH]
                 + arch_ref[E01, 2] * m01[:, 0:DH])
        mix02 = (arch_ref[E02, 0] * s
                 + arch_ref[E02, 1] * cat01[:, DH:2 * DH]
                 + arch_ref[E02, 2] * m01[:, DH:2 * DH])

        # edge (1,2): consumes node1
        cat2 = (mm(node1, wk32_ref[:, cb + SEG:cb + SEG + 2 * DH])
                + bias_ref[rb + 2:rb + 3, 0:2 * DH])                 # (TB, 64)
        m2 = (mm(jnp.maximum(cat2[:, DH:2 * DH], 0.0),
                 wk32_ref[:, cb + 2 * SEG:cb + 2 * SEG + DH])
              + bias_ref[rb + 3:rb + 4, 0:DH])                       # (TB, 32)
        mix12 = (arch_ref[E12, 0] * node1
                 + arch_ref[E12, 1] * cat2[:, 0:DH]
                 + arch_ref[E12, 2] * m2)
        node2 = mix02 + mix12
        # TODO(synk): canonical DARTS cells concatenate intermediate nodes; this
        # flat stand-in sums them to keep a fixed state width (matches the jnp ref).
        s = node1 + node2

    if mode == "dec":
        # raw (W+H)*d_output decoder slab, only needed for forward_only_with_net
        out_refs[0][...] = (mm(s, wk32_ref[:, C_PROJ:C_PROJ + OUT_PAD])
                            + bias_ref[R_PROJ:R_PROJ + 1, 0:OUT_PAD])
    else:
        # heads with the projection folded in at pack time, applied once on the
        # full backcast+forecast slab via per-timestep block-diagonal weights.
        # Outputs are lane-dense (TB, 128) -> unmasked stores.
        hl_ref, hm_ref = out_refs
        hl_ref[...] = (mm(s, wk32_ref[:, C_HL:C_HL + OUT_PAD])
                       + bias_ref[R_HL:R_HL + 1, 0:OUT_PAD])
        hm_h = jnp.maximum(mm(s, wk32_ref[:, C_HM1:C_HM1 + D_HH])
                           + bias_ref[R_HM1:R_HM1 + 1, 0:D_HH], 0.0)
        hm_ref[...] = (mm(hm_h, wk192_ref[...])
                       + bias_ref[R_HM2:R_HM2 + 1, 0:OUT_PAD])


def fused_forward(arch_p_encoder, x_flat, packed, mode):
    """Single pallas_call for the whole forward pass.

    Batch-tile grid: weights use constant index_maps (DMA'd once, resident
    across steps); batch tiles are `parallel` so >1 tile shards across the
    TensorCores on v7x.
    """
    wk32, wk64, wk192, bias = packed
    b_pad = x_flat.shape[0]
    nb = b_pad // TB
    n_out = 1 if mode == "dec" else 2

    def const_spec(a):
        return pl.BlockSpec(a.shape, lambda i: (0, 0))

    out_spec = pl.BlockSpec((TB, OUT_PAD), lambda i: (i, 0))
    out_struct = jax.ShapeDtypeStruct((b_pad, OUT_PAD), jnp.float32)
    out_specs = [out_spec] * n_out if n_out > 1 else out_spec
    out_shape = tuple([out_struct] * n_out) if n_out > 1 else out_struct

    return pl.pallas_call(
        functools.partial(_fused_forward_kernel, mode=mode),
        grid=(nb,),
        in_specs=[
            pl.BlockSpec(memory_space=pltpu.MemorySpace.SMEM),   # arch weights
            pl.BlockSpec((TB, D_FLAT), lambda i: (i, 0)),        # x batch tile
            const_spec(wk32), const_spec(wk64), const_spec(wk192),
            const_spec(bias),
        ],
        out_specs=out_specs,
        out_shape=out_shape,
        compiler_params=pltpu.CompilerParams(
            dimension_semantics=("parallel",),
            vmem_limit_bytes=8 * 1024 * 1024),   # resident footprint ~0.4 MB
    )(arch_p_encoder, x_flat, wk32, wk64, wk192, bias)


# --------------------------- deterministic params ---------------------------
def _dense(key, shape, scale=0.1):
    return scale * jax.random.normal(key, shape, dtype=jnp.float32)


def init_params(key):
    keys = iter(jax.random.split(key, 256))
    params = {
        "embed_w": _dense(next(keys), (WINDOW * D_INPUT, D_HIDDEN)),
        "embed_b": jnp.zeros((D_HIDDEN,), jnp.float32),
        "proj_w": _dense(next(keys), (D_HIDDEN, D_DEC)),
        "proj_b": jnp.zeros((D_DEC,), jnp.float32),
    }
    cells = []
    for _c in range(N_CELLS):
        edges = []
        for _e in range(N_EDGES):
            edges.append({
                "linear": {"w": _dense(next(keys), (D_HIDDEN, D_HIDDEN)),
                           "b": jnp.zeros((D_HIDDEN,), jnp.float32)},
                "mlp": {"w1": _dense(next(keys), (D_HIDDEN, D_HIDDEN)),
                        "b1": jnp.zeros((D_HIDDEN,), jnp.float32),
                        "w2": _dense(next(keys), (D_HIDDEN, D_HIDDEN)),
                        "b2": jnp.zeros((D_HIDDEN,), jnp.float32)},
            })
        cells.append(edges)
    params["cells"] = cells
    params["heads"] = {
        "linear": {"w": _dense(next(keys), (D_OUTPUT, D_OUTPUT)),
                   "b": jnp.zeros((D_OUTPUT,), jnp.float32)},
        "mlp": {"w1": _dense(next(keys), (D_OUTPUT, HEAD_HIDDEN)),
                "b1": jnp.zeros((HEAD_HIDDEN,), jnp.float32),
                "w2": _dense(next(keys), (HEAD_HIDDEN, D_OUTPUT)),
                "b2": jnp.zeros((D_OUTPUT,), jnp.float32)},
    }
    return params


def pack_params(params):
    """Pack raw params once into compact, 128-aligned fused-kernel operands.

    * weights keep only their live 32 K rows (no zero K-padding),
    * edges (0,1)/(0,2) are concatenated along N and their mlp second layers
      are block-diagonalised,
    * the decoder projection is folded into both heads,
    * everything lands in 4 arrays: wk32 [32,1408], wk64 [64,256],
      wk192 [192,128], bias [16,256]  (~355 KB total).
    """
    f32 = jnp.float32
    wk32 = jnp.zeros((D_HIDDEN, NK32), f32)
    wk64 = jnp.zeros((2 * D_HIDDEN, N_CELLS * SEG), f32)
    wk192 = jnp.zeros((D_HH, OUT_PAD), f32)
    bias = jnp.zeros((BIAS_ROWS, BIAS_COLS), f32)

    wk32 = wk32.at[:, C_EMBED:C_EMBED + D_HIDDEN].set(params["embed_w"])
    bias = bias.at[R_EMBED, 0:D_HIDDEN].set(params["embed_b"])

    for c in range(N_CELLS):
        cb = C_CELL0 + c * CELL_COLS
        rb = R_CELL0 + c * 4
        edges = params["cells"][c]
        e0, e1, e2 = edges[E01], edges[E02], edges[E12]
        # cat01 = [lin_w(e0) | lin_w(e1) | mlp_w1(e0) | mlp_w1(e1)]
        wk32 = wk32.at[:, cb + 0:cb + 32].set(e0["linear"]["w"])
        wk32 = wk32.at[:, cb + 32:cb + 64].set(e1["linear"]["w"])
        wk32 = wk32.at[:, cb + 64:cb + 96].set(e0["mlp"]["w1"])
        wk32 = wk32.at[:, cb + 96:cb + 128].set(e1["mlp"]["w1"])
        bias = bias.at[rb, 0:32].set(e0["linear"]["b"])
        bias = bias.at[rb, 32:64].set(e1["linear"]["b"])
        bias = bias.at[rb, 64:96].set(e0["mlp"]["b1"])
        bias = bias.at[rb, 96:128].set(e1["mlp"]["b1"])
        # block-diagonal mlp second layers of the fused edges
        wk64 = wk64.at[0:32, c * SEG + 0:c * SEG + 32].set(e0["mlp"]["w2"])
        wk64 = wk64.at[32:64, c * SEG + 32:c * SEG + 64].set(e1["mlp"]["w2"])
        bias = bias.at[rb + 1, 0:32].set(e0["mlp"]["b2"])
        bias = bias.at[rb + 1, 32:64].set(e1["mlp"]["b2"])
        # edge (1,2)
        wk32 = wk32.at[:, cb + SEG + 0:cb + SEG + 32].set(e2["linear"]["w"])
        wk32 = wk32.at[:, cb + SEG + 32:cb + SEG + 64].set(e2["mlp"]["w1"])
        wk32 = wk32.at[:, cb + 2 * SEG:cb + 2 * SEG + 32].set(e2["mlp"]["w2"])
        bias = bias.at[rb + 2, 0:32].set(e2["linear"]["b"])
        bias = bias.at[rb + 2, 32:64].set(e2["mlp"]["b1"])
        bias = bias.at[rb + 3, 0:32].set(e2["mlp"]["b2"])

    # fold the decoder projection into the heads (shortens the MXU chain);
    # heads act per timestep -> block-diagonal (kron) flat weights.
    eye = jnp.eye(T_TOTAL, dtype=f32)
    hl, hm = params["heads"]["linear"], params["heads"]["mlp"]
    pw, pb = params["proj_w"], params["proj_b"]
    hl_bd = jnp.kron(eye, hl["w"])          # (36, 36)
    hm1_bd = jnp.kron(eye, hm["w1"])        # (36, 192)
    hm2_bd = jnp.kron(eye, hm["w2"])        # (192, 36)
    wk32 = wk32.at[:, C_HL:C_HL + D_DEC].set(pw @ hl_bd)
    bias = bias.at[R_HL, 0:D_DEC].set(pb @ hl_bd + jnp.tile(hl["b"], T_TOTAL))
    wk32 = wk32.at[:, C_HM1:C_HM1 + D_HH].set(pw @ hm1_bd)
    bias = bias.at[R_HM1, 0:D_HH].set(pb @ hm1_bd + jnp.tile(hm["b1"], T_TOTAL))
    wk192 = wk192.at[:, 0:D_DEC].set(hm2_bd)
    bias = bias.at[R_HM2, 0:D_DEC].set(jnp.tile(hm["b2"], T_TOTAL))
    # un-folded projection, only used on the forward_only_with_net path
    wk32 = wk32.at[:, C_PROJ:C_PROJ + D_DEC].set(pw)
    bias = bias.at[R_PROJ, 0:D_DEC].set(pb)

    return (wk32, wk64, wk192, bias)


# -------------------------------- model glue --------------------------------
def forward(packed, x_past, x_future, arch_p_encoder, arch_p_heads,
            forward_only_with_net=False, forecast_only=False):
    # x_future / arch_p_heads are accepted for signature parity; the flat
    # (N-BEATS style) encoder does not consume future covariates, and the
    # reference forward never uses arch_p_heads.
    del x_future, arch_p_heads

    b = x_past.shape[0]
    b_pad = ((b + TB - 1) // TB) * TB            # fill the f32 sublane group
    x_flat = x_past.reshape(b, -1)
    if b_pad != b:
        x_flat = jnp.pad(x_flat, ((0, b_pad - b), (0, 0)))

    if forward_only_with_net:
        dec_p = fused_forward(arch_p_encoder, x_flat, packed, mode="dec")
        dec = dec_p[:b, :D_DEC].reshape(b, T_TOTAL, D_OUTPUT)
        backcast, forecast = dec[:, :WINDOW], dec[:, WINDOW:]
        return forecast if forecast_only else (backcast, forecast)

    hl_p, hm_p = fused_forward(arch_p_encoder, x_flat, packed, mode="heads")
    head_outs = [hp[:b, :D_DEC].reshape(b, T_TOTAL, D_OUTPUT)
                 for hp in (hl_p, hm_p)]
    forecast_heads = [y[:, WINDOW:] for y in head_outs]
    if forecast_only:
        return forecast_heads
    backcast_heads = [y[:, :WINDOW] for y in head_outs]
    return backcast_heads, forecast_heads


# --------------------------- pure-jnp reference ---------------------------
def reference_forward(params, x_past, arch):
    """Pure-jnp reference of the same synthesized model (verification only)."""
    b = x_past.shape[0]
    x_flat = x_past.reshape(b, WINDOW * D_INPUT)
    h0 = jax.nn.relu(x_flat @ params["embed_w"] + params["embed_b"])
    states = [h0] * N_CELL_INPUT_NODES
    for c in range(N_CELLS):
        nodes = list(states[-N_CELL_INPUT_NODES:])
        for i in range(N_NODES):
            acc = None
            for j in range(N_CELL_INPUT_NODES + i):
                e = EDGE2INDEX[(j, N_CELL_INPUT_NODES + i)]
                xin = nodes[j]
                p = params["cells"][c][e]
                lin = xin @ p["linear"]["w"] + p["linear"]["b"]
                mh = jax.nn.relu(xin @ p["mlp"]["w1"] + p["mlp"]["b1"])
                mo = mh @ p["mlp"]["w2"] + p["mlp"]["b2"]
                mixed = arch[e, 0] * xin + arch[e, 1] * lin + arch[e, 2] * mo
                acc = mixed if acc is None else acc + mixed
            nodes.append(acc)
        cell_out = nodes[N_CELL_INPUT_NODES]
        for extra in nodes[N_CELL_INPUT_NODES + 1:]:
            cell_out = cell_out + extra
        states.append(cell_out)
    dec = (states[-1] @ params["proj_w"] + params["proj_b"]).reshape(
        b, T_TOTAL, D_OUTPUT)
    hl = dec @ params["heads"]["linear"]["w"] + params["heads"]["linear"]["b"]
    hm_h = jax.nn.relu(dec @ params["heads"]["mlp"]["w1"]
                       + params["heads"]["mlp"]["b1"])
    hm = hm_h @ params["heads"]["mlp"]["w2"] + params["heads"]["mlp"]["b2"]
    outs = [hl, hm]
    return dec, [y[:, :WINDOW] for y in outs], [y[:, WINDOW:] for y in outs]


# ----------------------------------- main ------------------------------------
if __name__ == "__main__":
    key = jax.random.PRNGKey(0)
    k_param, k_past, k_fut, k_arch, k_ah = jax.random.split(key, 5)

    params = init_params(k_param)
    packed = pack_params(params)

    x_past = jax.random.normal(k_past, (BATCH, WINDOW, D_INPUT), jnp.float32)
    x_future = jax.random.normal(k_fut, (BATCH, HORIZON, D_FUTURE), jnp.float32)
    arch_p_encoder = jax.nn.softmax(
        jax.random.normal(k_arch, (N_EDGES, len(PRIMITIVES_ENCODER)),
                          jnp.float32), axis=-1)
    ah = jax.random.normal(k_ah, (2, len(HEADS)), jnp.float32)
    arch_p_heads = (jax.nn.softmax(ah[0]), jax.nn.softmax(ah[1]))

    fwd = jax.jit(forward,
                  static_argnames=("forward_only_with_net", "forecast_only"))

    # default path: per-head backcast / forecast lists
    backcast_list, forecast_list = fwd(packed, x_past, x_future,
                                       arch_p_encoder, arch_p_heads)
    jax.block_until_ready((backcast_list, forecast_list))

    # net-only path (specialized "dec" kernel variant)
    net_back, net_fore = fwd(packed, x_past, x_future, arch_p_encoder,
                             arch_p_heads, forward_only_with_net=True)
    jax.block_until_ready((net_back, net_fore))

    # correctness check against the pure-jnp reference of the same model
    ref_dec, ref_back, ref_fore = reference_forward(params, x_past,
                                                    arch_p_encoder)
    TOL = 1e-4   # all-f32 pipeline (tightened from 1e-2 per review)
    for got, ref in zip(list(backcast_list) + list(forecast_list),
                        list(ref_back) + list(ref_fore)):
        assert got.shape == ref.shape, (got.shape, ref.shape)
        max_err = float(jnp.max(jnp.abs(got - ref)))
        assert max_err < TOL, max_err
    net_err = float(jnp.max(jnp.abs(
        jnp.concatenate([net_back, net_fore], axis=1) - ref_dec)))
    assert net_err < TOL, net_err

    assert len(backcast_list) == len(HEADS) and len(forecast_list) == len(HEADS)
    assert backcast_list[0].shape == (BATCH, WINDOW, D_OUTPUT)
    assert forecast_list[0].shape == (BATCH, HORIZON, D_OUTPUT)
    assert net_back.shape == (BATCH, WINDOW, D_OUTPUT)
    assert net_fore.shape == (BATCH, HORIZON, D_OUTPUT)
    assert all(bool(jnp.all(jnp.isfinite(t)))
               for t in list(backcast_list) + list(forecast_list))
    print("KERNEL_OK")
</pallas_src>

<mosaic_0001>
module attributes {stable_mosaic.version = 11 : i64} {
  func.func @_fused_forward_kernel(%arg0: i32, %arg1: memref<3x3xf32, #tpu.memory_space<smem>>, %arg2: memref<8x32xf32, #tpu.memory_space<vmem>>, %arg3: memref<32x1408xf32, #tpu.memory_space<vmem>>, %arg4: memref<64x256xf32, #tpu.memory_space<vmem>>, %arg5: memref<192x128xf32, #tpu.memory_space<vmem>>, %arg6: memref<16x256xf32, #tpu.memory_space<vmem>>, %arg7: memref<8x128xf32, #tpu.memory_space<vmem>>, %arg8: memref<8x128xf32, #tpu.memory_space<vmem>>) attributes {dimension_semantics = [#tpu.dimension_semantics<parallel>], iteration_bounds = array<i64: 1>, scalar_prefetch = 0 : i64, scratch_operands = 0 : i64, tpu.core_type = #tpu.core_type<tc>, window_params = [{transform_indices = @transform_0, window_bounds = array<i64: 3, 3>}, {transform_indices = @transform_1, window_bounds = array<i64: 8, 32>}, {pipeline_mode = #tpu.pipeline_mode<synchronous>, transform_indices = @transform_2, window_bounds = array<i64: 32, 1408>}, {pipeline_mode = #tpu.pipeline_mode<synchronous>, transform_indices = @transform_3, window_bounds = array<i64: 64, 256>}, {pipeline_mode = #tpu.pipeline_mode<synchronous>, transform_indices = @transform_4, window_bounds = array<i64: 192, 128>}, {pipeline_mode = #tpu.pipeline_mode<synchronous>, transform_indices = @transform_5, window_bounds = array<i64: 16, 256>}, {transform_indices = @transform_6, window_bounds = array<i64: 8, 128>}, {transform_indices = @transform_7, window_bounds = array<i64: 8, 128>}]} {
    %c0 = arith.constant 0 : index
    %c0_0 = arith.constant 0 : index
    %0 = vector.load %arg2[%c0, %c0_0] : memref<8x32xf32, #tpu.memory_space<vmem>>, vector<8x32xf32>
    %c0_1 = arith.constant 0 : index
    %c0_2 = arith.constant 0 : index
    %1 = vector.load %arg3[%c0_1, %c0_2] : memref<32x1408xf32, #tpu.memory_space<vmem>>, vector<32x32xf32>
    %cst = arith.constant dense<0.000000e+00> : vector<8x32xf32>
    %2 = tpu.matmul %0, %1, %cst {dimension_numbers = #tpu.dot_dimension_numbers<[1], [0], [0], [1], [0, 0, 1, 1], [], []>} : vector<8x32xf32>, vector<32x32xf32>, vector<8x32xf32> -> vector<8x32xf32>
    %c0_3 = arith.constant 0 : index
    %c0_4 = arith.constant 0 : index
    %3 = vector.load %arg6[%c0_3, %c0_4] : memref<16x256xf32, #tpu.memory_space<vmem>>, vector<1x32xf32>
    %4 = vector.broadcast %3 : vector<1x32xf32> to vector<8x32xf32>
    %5 = arith.addf %2, %4 : vector<8x32xf32>
    %cst_5 = arith.constant 0.000000e+00 : f32
    %6 = vector.broadcast %cst_5 : f32 to vector<8x32xf32>
    %7 = arith.maximumf %5, %6 : vector<8x32xf32>
    %c0_6 = arith.constant 0 : index
    %c128 = arith.constant 128 : index
    %8 = vector.load %arg3[%c0_6, %c128] : memref<32x1408xf32, #tpu.memory_space<vmem>>, vector<32x128xf32>
    %cst_7 = arith.constant dense<0.000000e+00> : vector<8x128xf32>
    %9 = tpu.matmul %7, %8, %cst_7 {dimension_numbers = #tpu.dot_dimension_numbers<[1], [0], [0], [1], [0, 0, 1, 1], [], []>} : vector<8x32xf32>, vector<32x128xf32>, vector<8x128xf32> -> vector<8x128xf32>
    %c1 = arith.constant 1 : index
    %c0_8 = arith.constant 0 : index
    %10 = vector.load %arg6[%c1, %c0_8] : memref<16x256xf32, #tpu.memory_space<vmem>>, vector<1x128xf32>
    %11 = vector.broadcast %10 : vector<1x128xf32> to vector<8x128xf32>
    %12 = arith.addf %9, %11 : vector<8x128xf32>
    %13 = vector.extract_strided_slice %12 {offsets = [0, 64], sizes = [8, 64], strides = [1, 1]} : vector<8x128xf32> to vector<8x64xf32>
    %cst_9 = arith.constant 0.000000e+00 : f32
    %14 = vector.broadcast %cst_9 : f32 to vector<8x64xf32>
    %15 = arith.maximumf %13, %14 : vector<8x64xf32>
    %c0_10 = arith.constant 0 : index
    %c0_11 = arith.constant 0 : index
    %16 = vector.load %arg4[%c0_10, %c0_11] : memref<64x256xf32, #tpu.memory_space<vmem>>, vector<64x64xf32>
    %cst_12 = arith.constant dense<0.000000e+00> : vector<8x64xf32>
    %17 = tpu.matmul %15, %16, %cst_12 {dimension_numbers = #tpu.dot_dimension_numbers<[1], [0], [0], [1], [0, 0, 1, 1], [], []>} : vector<8x64xf32>, vector<64x64xf32>, vector<8x64xf32> -> vector<8x64xf32>
    %c2 = arith.constant 2 : index
    %c0_13 = arith.constant 0 : index
    %18 = vector.load %arg6[%c2, %c0_13] : memref<16x256xf32, #tpu.memory_space<vmem>>, vector<1x64xf32>
    %19 = vector.broadcast %18 : vector<1x64xf32> to vector<8x64xf32>
    %20 = arith.addf %17, %19 : vector<8x64xf32>
    %c0_14 = arith.constant 0 : index
    %c0_15 = arith.constant 0 : index
    %21 = memref.load %arg1[%c0_14, %c0_15] : memref<3x3xf32, #tpu.memory_space<smem>>
    %22 = vector.broadcast %21 : f32 to vector<8x32xf32>
    %23 = arith.mulf %22, %7 : vector<8x32xf32>
    %c0_16 = arith.constant 0 : index
    %c1_17 = arith.constant 1 : index
    %24 = memref.load %arg1[%c0_16, %c1_17] : memref<3x3xf32, #tpu.memory_space<smem>>
    %25 = vector.extract_strided_slice %12 {offsets = [0, 0], sizes = [8, 32], strides = [1, 1]} : vector<8x128xf32> to vector<8x32xf32>
    %26 = vector.broadcast %24 : f32 to vector<8x32xf32>
    %27 = arith.mulf %26, %25 : vector<8x32xf32>
    %28 = arith.addf %23, %27 : vector<8x32xf32>
    %c0_18 = arith.constant 0 : index
    %c2_19 = arith.constant 2 : index
    %29 = memref.load %arg1[%c0_18, %c2_19] : memref<3x3xf32, #tpu.memory_space<smem>>
    %30 = vector.extract_strided_slice %20 {offsets = [0, 0], sizes = [8, 32], strides = [1, 1]} : vector<8x64xf32> to vector<8x32xf32>
    %31 = vector.broadcast %29 : f32 to vector<8x32xf32>
    %32 = arith.mulf %31, %30 : vector<8x32xf32>
    %33 = arith.addf %28, %32 : vector<8x32xf32>
    %c1_20 = arith.constant 1 : index
    %c0_21 = arith.constant 0 : index
    %34 = memref.load %arg1[%c1_20, %c0_21] : memref<3x3xf32, #tpu.memory_space<smem>>
    %35 = vector.broadcast %34 : f32 to vector<8x32xf32>
    %36 = arith.mulf %35, %7 : vector<8x32xf32>
    %c1_22 = arith.constant 1 : index
    %c1_23 = arith.constant 1 : index
    %37 = memref.load %arg1[%c1_22, %c1_23] : memref<3x3xf32, #tpu.memory_space<smem>>
    %38 = vector.extract_strided_slice %12 {offsets = [0, 32], sizes = [8, 32], strides = [1, 1]} : vector<8x128xf32> to vector<8x32xf32>
    %39 = vector.broadcast %37 : f32 to vector<8x32xf32>
    %40 = arith.mulf %39, %38 : vector<8x32xf32>
    %41 = arith.addf %36, %40 : vector<8x32xf32>
    %c1_24 = arith.constant 1 : index
    %c2_25 = arith.constant 2 : index
    %42 = memref.load %arg1[%c1_24, %c2_25] : memref<3x3xf32, #tpu.memory_space<smem>>
    %43 = vector.extract_strided_slice %20 {offsets = [0, 32], sizes = [8, 32], strides = [1, 1]} : vector<8x64xf32> to vector<8x32xf32>
    %44 = vector.broadcast %42 : f32 to vector<8x32xf32>
    %45 = arith.mulf %44, %43 : vector<8x32xf32>
    %46 = arith.addf %41, %45 : vector<8x32xf32>
    %c0_26 = arith.constant 0 : index
    %c256 = arith.constant 256 : index
    %47 = vector.load %arg3[%c0_26, %c256] : memref<32x1408xf32, #tpu.memory_space<vmem>>, vector<32x64xf32>
    %cst_27 = arith.constant dense<0.000000e+00> : vector<8x64xf32>
    %48 = tpu.matmul %33, %47, %cst_27 {dimension_numbers = #tpu.dot_dimension_numbers<[1], [0], [0], [1], [0, 0, 1, 1], [], []>} : vector<8x32xf32>, vector<32x64xf32>, vector<8x64xf32> -> vector<8x64xf32>
    %c3 = arith.constant 3 : index
    %c0_28 = arith.constant 0 : index
    %49 = vector.load %arg6[%c3, %c0_28] : memref<16x256xf32, #tpu.memory_space<vmem>>, vector<1x64xf32>
    %50 = vector.broadcast %49 : vector<1x64xf32> to vector<8x64xf32>
    %51 = arith.addf %48, %50 : vector<8x64xf32>
    %52 = vector.extract_strided_slice %51 {offsets = [0, 32], sizes = [8, 32], strides = [1, 1]} : vector<8x64xf32> to vector<8x32xf32>
    %cst_29 = arith.constant 0.000000e+00 : f32
    %53 = vector.broadcast %cst_29 : f32 to vector<8x32xf32>
    %54 = arith.maximumf %52, %53 : vector<8x32xf32>
    %c0_30 = arith.constant 0 : index
    %c384 = arith.constant 384 : index
    %55 = vector.load %arg3[%c0_30, %c384] : memref<32x1408xf32, #tpu.memory_space<vmem>>, vector<32x32xf32>
    %cst_31 = arith.constant dense<0.000000e+00> : vector<8x32xf32>
    %56 = tpu.matmul %54, %55, %cst_31 {dimension_numbers = #tpu.dot_dimension_numbers<[1], [0], [0], [1], [0, 0, 1, 1], [], []>} : vector<8x32xf32>, vector<32x32xf32>, vector<8x32xf32> -> vector<8x32xf32>
    %c4 = arith.constant 4 : index
    %c0_32 = arith.constant 0 : index
    %57 = vector.load %arg6[%c4, %c0_32] : memref<16x256xf32, #tpu.memory_space<vmem>>, vector<1x32xf32>
    %58 = vector.broadcast %57 : vector<1x32xf32> to vector<8x32xf32>
    %59 = arith.addf %56, %58 : vector<8x32xf32>
    %c2_33 = arith.constant 2 : index
    %c0_34 = arith.constant 0 : index
    %60 = memref.load %arg1[%c2_33, %c0_34] : memref<3x3xf32, #tpu.memory_space<smem>>
    %61 = vector.broadcast %60 : f32 to vector<8x32xf32>
    %62 = arith.mulf %61, %33 : vector<8x32xf32>
    %c2_35 = arith.constant 2 : index
    %c1_36 = arith.constant 1 : index
    %63 = memref.load %arg1[%c2_35, %c1_36] : memref<3x3xf32, #tpu.memory_space<smem>>
    %64 = vector.extract_strided_slice %51 {offsets = [0, 0], sizes = [8, 32], strides = [1, 1]} : vector<8x64xf32> to vector<8x32xf32>
    %65 = vector.broadcast %63 : f32 to vector<8x32xf32>
    %66 = arith.mulf %65, %64 : vector<8x32xf32>
    %67 = arith.addf %62, %66 : vector<8x32xf32>
    %c2_37 = arith.constant 2 : index
    %c2_38 = arith.constant 2 : index
    %68 = memref.load %arg1[%c2_37, %c2_38] : memref<3x3xf32, #tpu.memory_space<smem>>
    %69 = vector.broadcast %68 : f32 to vector<8x32xf32>
    %70 = arith.mulf %69, %59 : vector<8x32xf32>
    %71 = arith.addf %67, %70 : vector<8x32xf32>
    %72 = arith.addf %46, %71 : vector<8x32xf32>
    %73 = arith.addf %33, %72 : vector<8x32xf32>
    %c0_39 = arith.constant 0 : index
    %c512 = arith.constant 512 : index
    %74 = vector.load %arg3[%c0_39, %c512] : memref<32x1408xf32, #tpu.memory_space<vmem>>, vector<32x128xf32>
    %cst_40 = arith.constant dense<0.000000e+00> : vector<8x128xf32>
    %75 = tpu.matmul %73, %74, %cst_40 {dimension_numbers = #tpu.dot_dimension_numbers<[1], [0], [0], [1], [0, 0, 1, 1], [], []>} : vector<8x32xf32>, vector<32x128xf32>, vector<8x128xf32> -> vector<8x128xf32>
    %c5 = arith.constant 5 : index
    %c0_41 = arith.constant 0 : index
    %76 = vector.load %arg6[%c5, %c0_41] : memref<16x256xf32, #tpu.memory_space<vmem>>, vector<1x128xf32>
    %77 = vector.broadcast %76 : vector<1x128xf32> to vector<8x128xf32>
    %78 = arith.addf %75, %77 : vector<8x128xf32>
    %79 = vector.extract_strided_slice %78 {offsets = [0, 64], sizes = [8, 64], strides = [1, 1]} : vector<8x128xf32> to vector<8x64xf32>
    %cst_42 = arith.constant 0.000000e+00 : f32
    %80 = vector.broadcast %cst_42 : f32 to vector<8x64xf32>
    %81 = arith.maximumf %79, %80 : vector<8x64xf32>
    %c0_43 = arith.constant 0 : index
    %c128_44 = arith.constant 128 : index
    %82 = vector.load %arg4[%c0_43, %c128_44] : memref<64x256xf32, #tpu.memory_space<vmem>>, vector<64x64xf32>
    %cst_45 = arith.constant dense<0.000000e+00> : vector<8x64xf32>
    %83 = tpu.matmul %81, %82, %cst_45 {dimension_numbers = #tpu.dot_dimension_numbers<[1], [0], [0], [1], [0, 0, 1, 1], [], []>} : vector<8x64xf32>, vector<64x64xf32>, vector<8x64xf32> -> vector<8x64xf32>
    %c6 = arith.constant 6 : index
    %c0_46 = arith.constant 0 : index
    %84 = vector.load %arg6[%c6, %c0_46] : memref<16x256xf32, #tpu.memory_space<vmem>>, vector<1x64xf32>
    %85 = vector.broadcast %84 : vector<1x64xf32> to vector<8x64xf32>
    %86 = arith.addf %83, %85 : vector<8x64xf32>
    %c0_47 = arith.constant 0 : index
    %c0_48 = arith.constant 0 : index
    %87 = memref.load %arg1[%c0_47, %c0_48] : memref<3x3xf32, #tpu.memory_space<smem>>
    %88 = vector.broadcast %87 : f32 to vector<8x32xf32>
    %89 = arith.mulf %88, %73 : vector<8x32xf32>
    %c0_49 = arith.constant 0 : index
    %c1_50 = arith.constant 1 : index
    %90 = memref.load %arg1[%c0_49, %c1_50] : memref<3x3xf32, #tpu.memory_space<smem>>
    %91 = vector.extract_strided_slice %78 {offsets = [0, 0], sizes = [8, 32], strides = [1, 1]} : vector<8x128xf32> to vector<8x32xf32>
    %92 = vector.broadcast %90 : f32 to vector<8x32xf32>
    %93 = arith.mulf %92, %91 : vector<8x32xf32>
    %94 = arith.addf %89, %93 : vector<8x32xf32>
    %c0_51 = arith.constant 0 : index
    %c2_52 = arith.constant 2 : index
    %95 = memref.load %arg1[%c0_51, %c2_52] : memref<3x3xf32, #tpu.memory_space<smem>>
    %96 = vector.extract_strided_slice %86 {offsets = [0, 0], sizes = [8, 32], strides = [1, 1]} : vector<8x64xf32> to vector<8x32xf32>
    %97 = vector.broadcast %95 : f32 to vector<8x32xf32>
    %98 = arith.mulf %97, %96 : vector<8x32xf32>
    %99 = arith.addf %94, %98 : vector<8x32xf32>
    %c1_53 = arith.constant 1 : index
    %c0_54 = arith.constant 0 : index
    %100 = memref.load %arg1[%c1_53, %c0_54] : memref<3x3xf32, #tpu.memory_space<smem>>
    %101 = vector.broadcast %100 : f32 to vector<8x32xf32>
    %102 = arith.mulf %101, %73 : vector<8x32xf32>
    %c1_55 = arith.constant 1 : index
    %c1_56 = arith.constant 1 : index
    %103 = memref.load %arg1[%c1_55, %c1_56] : memref<3x3xf32, #tpu.memory_space<smem>>
    %104 = vector.extract_strided_slice %78 {offsets = [0, 32], sizes = [8, 32], strides = [1, 1]} : vector<8x128xf32> to vector<8x32xf32>
    %105 = vector.broadcast %103 : f32 to vector<8x32xf32>
    %106 = arith.mulf %105, %104 : vector<8x32xf32>
    %107 = arith.addf %102, %106 : vector<8x32xf32>
    %c1_57 = arith.constant 1 : index
    %c2_58 = arith.constant 2 : index
    %108 = memref.load %arg1[%c1_57, %c2_58] : memref<3x3xf32, #tpu.memory_space<smem>>
    %109 = vector.extract_strided_slice %86 {offsets = [0, 32], sizes = [8, 32], strides = [1, 1]} : vector<8x64xf32> to vector<8x32xf32>
    %110 = vector.broadcast %108 : f32 to vector<8x32xf32>
    %111 = arith.mulf %110, %109 : vector<8x32xf32>
    %112 = arith.addf %107, %111 : vector<8x32xf32>
    %c0_59 = arith.constant 0 : index
    %c640 = arith.constant 640 : index
    %113 = vector.load %arg3[%c0_59, %c640] : memref<32x1408xf32, #tpu.memory_space<vmem>>, vector<32x64xf32>
    %cst_60 = arith.constant dense<0.000000e+00> : vector<8x64xf32>
    %114 = tpu.matmul %99, %113, %cst_60 {dimension_numbers = #tpu.dot_dimension_numbers<[1], [0], [0], [1], [0, 0, 1, 1], [], []>} : vector<8x32xf32>, vector<32x64xf32>, vector<8x64xf32> -> vector<8x64xf32>
    %c7 = arith.constant 7 : index
    %c0_61 = arith.constant 0 : index
    %115 = vector.load %arg6[%c7, %c0_61] : memref<16x256xf32, #tpu.memory_space<vmem>>, vector<1x64xf32>
    %116 = vector.broadcast %115 : vector<1x64xf32> to vector<8x64xf32>
    %117 = arith.addf %114, %116 : vector<8x64xf32>
    %118 = vector.extract_strided_slice %117 {offsets = [0, 32], sizes = [8, 32], strides = [1, 1]} : vector<8x64xf32> to vector<8x32xf32>
    %cst_62 = arith.constant 0.000000e+00 : f32
    %119 = vector.broadcast %cst_62 : f32 to vector<8x32xf32>
    %120 = arith.maximumf %118, %119 : vector<8x32xf32>
    %c0_63 = arith.constant 0 : index
    %c768 = arith.constant 768 : index
    %121 = vector.load %arg3[%c0_63, %c768] : memref<32x1408xf32, #tpu.memory_space<vmem>>, vector<32x32xf32>
    %cst_64 = arith.constant dense<0.000000e+00> : vector<8x32xf32>
    %122 = tpu.matmul %120, %121, %cst_64 {dimension_numbers = #tpu.dot_dimension_numbers<[1], [0], [0], [1], [0, 0, 1, 1], [], []>} : vector<8x32xf32>, vector<32x32xf32>, vector<8x32xf32> -> vector<8x32xf32>
    %c8 = arith.constant 8 : index
    %c0_65 = arith.constant 0 : index
    %123 = vector.load %arg6[%c8, %c0_65] : memref<16x256xf32, #tpu.memory_space<vmem>>, vector<1x32xf32>
    %124 = vector.broadcast %123 : vector<1x32xf32> to vector<8x32xf32>
    %125 = arith.addf %122, %124 : vector<8x32xf32>
    %c2_66 = arith.constant 2 : index
    %c0_67 = arith.constant 0 : index
    %126 = memref.load %arg1[%c2_66, %c0_67] : memref<3x3xf32, #tpu.memory_space<smem>>
    %127 = vector.broadcast %126 : f32 to vector<8x32xf32>
    %128 = arith.mulf %127, %99 : vector<8x32xf32>
    %c2_68 = arith.constant 2 : index
    %c1_69 = arith.constant 1 : index
    %129 = memref.load %arg1[%c2_68, %c1_69] : memref<3x3xf32, #tpu.memory_space<smem>>
    %130 = vector.extract_strided_slice %117 {offsets = [0, 0], sizes = [8, 32], strides = [1, 1]} : vector<8x64xf32> to vector<8x32xf32>
    %131 = vector.broadcast %129 : f32 to vector<8x32xf32>
    %132 = arith.mulf %131, %130 : vector<8x32xf32>
    %133 = arith.addf %128, %132 : vector<8x32xf32>
    %c2_70 = arith.constant 2 : index
    %c2_71 = arith.constant 2 : index
    %134 = memref.load %arg1[%c2_70, %c2_71] : memref<3x3xf32, #tpu.memory_space<smem>>
    %135 = vector.broadcast %134 : f32 to vector<8x32xf32>
    %136 = arith.mulf %135, %125 : vector<8x32xf32>
    %137 = arith.addf %133, %136 : vector<8x32xf32>
    %138 = arith.addf %112, %137 : vector<8x32xf32>
    %139 = arith.addf %99, %138 : vector<8x32xf32>
    %c0_72 = arith.constant 0 : index
    %c896 = arith.constant 896 : index
    %140 = vector.load %arg3[%c0_72, %c896] : memref<32x1408xf32, #tpu.memory_space<vmem>>, vector<32x128xf32>
    %cst_73 = arith.constant dense<0.000000e+00> : vector<8x128xf32>
    %141 = tpu.matmul %139, %140, %cst_73 {dimension_numbers = #tpu.dot_dimension_numbers<[1], [0], [0], [1], [0, 0, 1, 1], [], []>} : vector<8x32xf32>, vector<32x128xf32>, vector<8x128xf32> -> vector<8x128xf32>
    %c9 = arith.constant 9 : index
    %c0_74 = arith.constant 0 : index
    %142 = vector.load %arg6[%c9, %c0_74] : memref<16x256xf32, #tpu.memory_space<vmem>>, vector<1x128xf32>
    %143 = vector.broadcast %142 : vector<1x128xf32> to vector<8x128xf32>
    %144 = arith.addf %141, %143 : vector<8x128xf32>
    %c0_75 = arith.constant 0 : index
    %c0_76 = arith.constant 0 : index
    %145 = vector.load %arg7[%c0_75, %c0_76] : memref<8x128xf32, #tpu.memory_space<vmem>>, vector<8x128xf32>
    tpu.vector_store %arg7[%c0_75, %c0_76], %144 {strides = array<i32>} : memref<8x128xf32, #tpu.memory_space<vmem>>, vector<8x128xf32>,
    %c0_77 = arith.constant 0 : index
    %c1024 = arith.constant 1024 : index
    %146 = vector.load %arg3[%c0_77, %c1024] : memref<32x1408xf32, #tpu.memory_space<vmem>>, vector<32x192xf32>
    %cst_78 = arith.constant dense<0.000000e+00> : vector<8x192xf32>
    %147 = tpu.matmul %139, %146, %cst_78 {dimension_numbers = #tpu.dot_dimension_numbers<[1], [0], [0], [1], [0, 0, 1, 1], [], []>} : vector<8x32xf32>, vector<32x192xf32>, vector<8x192xf32> -> vector<8x192xf32>
    %c10 = arith.constant 10 : index
    %c0_79 = arith.constant 0 : index
    %148 = vector.load %arg6[%c10, %c0_79] : memref<16x256xf32, #tpu.memory_space<vmem>>, vector<1x192xf32>
    %149 = vector.broadcast %148 : vector<1x192xf32> to vector<8x192xf32>
    %150 = arith.addf %147, %149 : vector<8x192xf32>
    %cst_80 = arith.constant 0.000000e+00 : f32
    %151 = vector.broadcast %cst_80 : f32 to vector<8x192xf32>
    %152 = arith.maximumf %150, %151 : vector<8x192xf32>
    %c0_81 = arith.constant 0 : index
    %c0_82 = arith.constant 0 : index
    %153 = vector.load %arg5[%c0_81, %c0_82] : memref<192x128xf32, #tpu.memory_space<vmem>>, vector<192x128xf32>
    %cst_83 = arith.constant dense<0.000000e+00> : vector<8x128xf32>
    %154 = tpu.matmul %152, %153, %cst_83 {dimension_numbers = #tpu.dot_dimension_numbers<[1], [0], [0], [1], [0, 0, 1, 1], [], []>} : vector<8x192xf32>, vector<192x128xf32>, vector<8x128xf32> -> vector<8x128xf32>
    %c11 = arith.constant 11 : index
    %c0_84 = arith.constant 0 : index
    %155 = vector.load %arg6[%c11, %c0_84] : memref<16x256xf32, #tpu.memory_space<vmem>>, vector<1x128xf32>
    %156 = vector.broadcast %155 : vector<1x128xf32> to vector<8x128xf32>
    %157 = arith.addf %154, %156 : vector<8x128xf32>
    %c0_85 = arith.constant 0 : index
    %c0_86 = arith.constant 0 : index
    %158 = vector.load %arg8[%c0_85, %c0_86] : memref<8x128xf32, #tpu.memory_space<vmem>>, vector<8x128xf32>
    tpu.vector_store %arg8[%c0_85, %c0_86], %157 {strides = array<i32>} : memref<8x128xf32, #tpu.memory_space<vmem>>, vector<8x128xf32>,
    return
  }
  func.func @transform_0(%arg0: i32) -> (i32, i32) {
    %c0_i32 = arith.constant 0 : i32
    %c0_i32_0 = arith.constant 0 : i32
    %c0_i32_1 = arith.constant 0 : i32
    return %c0_i32, %c0_i32_0 : i32, i32
  }
  func.func @transform_1(%arg0: i32) -> (i32, i32) {
    %c0_i32 = arith.constant 0 : i32
    %c0_i32_0 = arith.constant 0 : i32
    return %arg0, %c0_i32 : i32, i32
  }
  func.func @transform_2(%arg0: i32) -> (i32, i32) {
    %c0_i32 = arith.constant 0 : i32
    %c0_i32_0 = arith.constant 0 : i32
    %c0_i32_1 = arith.constant 0 : i32
    return %c0_i32, %c0_i32_0 : i32, i32
  }
  func.func @transform_3(%arg0: i32) -> (i32, i32) {
    %c0_i32 = arith.constant 0 : i32
    %c0_i32_0 = arith.constant 0 : i32
    %c0_i32_1 = arith.constant 0 : i32
    return %c0_i32, %c0_i32_0 : i32, i32
  }
  func.func @transform_4(%arg0: i32) -> (i32, i32) {
    %c0_i32 = arith.constant 0 : i32
    %c0_i32_0 = arith.constant 0 : i32
    %c0_i32_1 = arith.constant 0 : i32
    return %c0_i32, %c0_i32_0 : i32, i32
  }
  func.func @transform_5(%arg0: i32) -> (i32, i32) {
    %c0_i32 = arith.constant 0 : i32
    %c0_i32_0 = arith.constant 0 : i32
    %c0_i32_1 = arith.constant 0 : i32
    return %c0_i32, %c0_i32_0 : i32, i32
  }
  func.func @transform_6(%arg0: i32) -> (i32, i32) {
    %c0_i32 = arith.constant 0 : i32
    %c0_i32_0 = arith.constant 0 : i32
    return %arg0, %c0_i32 : i32, i32
  }
  func.func @transform_7(%arg0: i32) -> (i32, i32) {
    %c0_i32 = arith.constant 0 : i32
    %c0_i32_0 = arith.constant 0 : i32
    return %arg0, %c0_i32 : i32, i32
  }
}

</mosaic_0001>

<bundles_post_ra>
// kernel: forward.1
= control target key start
LH: loop header
LB: loop body
LE: loop exit
PB: predicated region body
PF: predicated region fallthrough
CT: control target
= control target key end

     0   :  { %13 = vsyncpa [#allocation4], 0  ;;  %s1755_s0 = inlined_call_operand.vmem [shape: f32[3,3], index: 0, kind: input, shape index: {}]   ;;  %s1756_s1 = inlined_call_operand.vmem [shape: f32[8,32], index: 1, kind: input, shape index: {}]   ;;  %s1757_s2 = inlined_call_operand.hbm [shape: f32[32,1408], index: 2, kind: input, shape index: {}]   ;;  %s1758_s3 = inlined_call_operand.hbm [shape: f32[64,256], index: 3, kind: input, shape index: {}]   ;;  %s1759_s4 = inlined_call_operand.hbm [shape: f32[192,128], index: 4, kind: input, shape index: {}]   ;;  %s1760_s5 = inlined_call_operand.vmem [shape: f32[16,256], index: 5, kind: input, shape index: {}]   ;;  %s1761_s6 = inlined_call_operand.vmem [shape: f32[8,128], index: 6, kind: output, shape index: {0}]   ;;  %s1762_s7 = inlined_call_operand.vmem [shape: f32[8,128], index: 7, kind: output, shape index: {1}]  }
   0x1   :  { %14 = vsyncpa [#allocation3], 0 }
   0x2   :  { %15 = vsyncpa [#allocation7], 0  ;;  %s1453_s24 = smov [#allocation6]   ;;  %s22_s28 = sshll.u32 %s1755_s0, 4  ;;  %s23_s28 = int_to_ptr.vmem [resolvable:$true] %s22_s28 }
   0x3   :  { %s45_s25 = sshll.u32 %s1453_s24, 4  ;;  %s46_s25 = int_to_ptr.vmem [resolvable:$true] %s45_s25 }
   0x4   :  { %s1383_s29 = scalar_lea.vmem %s46_s25, 2048  ;;  %p1388_p1 = scmp.lt.s32.totalorder %s46_s25, %s46_s25 }
   0x5   :  { %p1384_p0 = scmp.ne.s32.totalorder %s46_s25, %s1383_s29  ;;  %p1389_p2 = scmp.lt.s32.totalorder %s1383_s29, %s1383_s29 }
   0x7   :  { %p1390_p3 = por %p1389_p2, %p1388_p1 }
   0x9   :  { %p1391_p4 = pnand %p1390_p3, %p1384_p0 }
   0xb   :  { %1394 = shalt.err (!%p1391_p4)
}
   0xc   :  { %s1454_s30 = smov 256   ;;  %s1455_s8 = smov 16  }
   0xd   :  { %51 = dma.hbm_to_vmem [thread:$0]  %s1758_s3, 2048, %s46_s25, [#allocation7], %s1454_s30, %s1454_s30, %s1455_s8  }
   0xe   :  { %s1395_s11 = scalar_lea.vmem %s23_s28, 64  ;;  %p1400_p6 = scmp.lt.s32.totalorder %s23_s28, %s23_s28 }
   0xf   :  { %p1396_p5 = scmp.ne.s32.totalorder %s23_s28, %s1395_s11  ;;  %p1401_p7 = scmp.lt.s32.totalorder %s1395_s11, %s1395_s11 }
  0x11   :  { %p1402_p8 = por %p1401_p7, %p1400_p6 }
  0x13   :  { %p1403_p9 = pnand %p1402_p8, %p1396_p5 }
  0x15   :  { %1406 = shalt.err (!%p1403_p9)
}
  0x16   :  { %s1456_s0 = smov [#allocation2]   ;;  %s1457_s12 = smov [#allocation5]  }
  0x17   :  { %25 = dma.vmem_to_smem %s23_s28, 64, %s1456_s0, [#allocation4]  }
  0x18   :  { %s33_s13 = sshll.u32 %s1457_s12, 4  ;;  %s34_s13 = int_to_ptr.vmem [resolvable:$true] %s33_s13 }
  0x19   :  { %s1415_s14 = scalar_lea.vmem %s34_s13, 5632  ;;  %p1420_p11 = scmp.lt.s32.totalorder %s34_s13, %s34_s13 }
  0x1a   :  { %p1416_p10 = scmp.ne.s32.totalorder %s34_s13, %s1415_s14  ;;  %p1421_p12 = scmp.lt.s32.totalorder %s1415_s14, %s1415_s14 }
  0x1c   :  { %p1422_p13 = por %p1421_p12, %p1420_p11 }
  0x1e   :  { %p1423_p0 = pnand %p1422_p13, %p1416_p10 }
  0x20   :  { %1426 = shalt.err (!%p1423_p0)
}
  0x21   :  { %s1458_s3 = smov 1408   ;;  %s1459_s15 = smov 88  }
  0x22   :  { %39 = dma.hbm_to_vmem [thread:$0]  %s1757_s2, 5632, %s34_s13, [#allocation3], %s1458_s3, %s1458_s3, %s1459_s15  }
  0x23   :  { %s1460_s18 = smov [#allocation8]  }
  0x24   :  { %s57_s19 = sshll.u32 %s1460_s18, 4  ;;  %s58_s19 = int_to_ptr.vmem [resolvable:$true] %s57_s19 }
  0x25   :  { %s1435_s20 = scalar_lea.vmem %s58_s19, 3072  ;;  %p1440_p2 = scmp.lt.s32.totalorder %s58_s19, %s58_s19 }
  0x26   :  { %p1436_p1 = scmp.ne.s32.totalorder %s58_s19, %s1435_s20  ;;  %p1441_p3 = scmp.lt.s32.totalorder %s1435_s20, %s1435_s20 }
  0x28   :  { %p1442_p4 = por %p1441_p3, %p1440_p2 }
  0x2a   :  { %p1443_p5 = pnand %p1442_p4, %p1436_p1 }
  0x2c   :  { %1446 = shalt.err (!%p1443_p5)
}
  0x2d   :  { %s1461_s21 = smov 128   ;;  %s1462_s22 = smov 8  }
  0x2e   :  { %63 = dma.hbm_to_vmem [thread:$0]  %s1759_s4, 3072, %s58_s19, [#allocation7], %s1461_s21, %s1461_s21, %s1462_s22  }
  0x2f   :  { %1447 = dma.done.wait [#allocation4], 64  }
  0x30   :  { %1448 = vsyncadd [#allocation4], 4294967232 }
  0x31   :  { %1449 = dma.done.wait [#allocation3], 5632  }
  0x32   :  { %1450 = vsyncadd [#allocation3], 4294961664 }
  0x33   :  { %1451 = dma.done.wait [#allocation7], 5120  }
  0x34   :  { %1452 = vsyncadd [#allocation7], 4294962176 }
  0x35   :  { %78 = sfence }
  0x36   :  { %v83_v0 = vld [vmem:[#allocation5 + $0x108] sm:$0xff]  ;;  %v1463_v1 = vmov 0.0   ;;  %v82_v2 = vld [vmem:[#allocation5 + $0xb0] sm:$0xff]  ;;  %vm1464_vm0 = vmmov 0   ;;  %v81_v4 = vld [vmem:[#allocation5 + $0x58] sm:$0xff]  ;;  %vm85_vm1 = vcmask 261120  }
  0x37   :  { %1235 = vmatprep.subr.mxu0 %v1463_v1  ;;  %1243 = vmatprep.mubr.msk.f32.mxu0 %vm1464_vm0, %v1463_v1  ;;  %v163_v3 = vld [vmem:[#allocation5 + $0x110] sm:$0xff]  ;;  %v80_v5 = vld [vmem:[#allocation5] sm:$0xff]  ;;  %v162_v7 = vld [vmem:[#allocation5 + $0xb8] sm:$0xff]  ;;  %s1556_s26 = sld [smem:[#allocation2]]  ;;  %s1465_s8 = smov 96   ;;  %vm251_vm2 = vcmask 523264  }
  0x38   :  { %1236 = vmatpush3.msra.mxu0 %v83_v0  ;;  %1246 = vmatprep.subr.mxu1 %v1463_v1  ;;  %v79_v6 = vld [vmem:[%s1756_s1] sm:$0xff]  ;;  %v160_v9 = vld [vmem:[#allocation5 + $0x8] sm:$0xff]  ;;  %v246_v15 = vld [vmem:[#allocation6 + $0x70] sm:$0xff]  ;;  %s1558_s27 = sld [smem:[#allocation2 + $0x1]]  ;;  %s1466_s9 = smov 64  }
  0x39   :  { %1237 = vmatprep.subr.mxu0 %v1463_v1  ;;  %1247 = vmatpush3.msra.mxu1 %v163_v3  ;;  %v161_v8 = vld [vmem:[#allocation5 + $0x60] sm:$0xff]  ;;  %v244_v17 = vld [vmem:[#allocation6 + $0x50] sm:$0xff]  ;;  %s1560_s28 = sld [smem:[#allocation2 + $0x81]]  ;;  %v357_v36 = vld [vmem:[#allocation5 + $0x118] sm:$0xff] }
  0x3a   :  { %1238 = vmatpush3.msra.mxu0 %v82_v2  ;;  %1248 = vmatprep.subr.mxu1 %v1463_v1  ;;  %v84_v10 = vld [vmem:[%s1760_s5] ss:$0 sm:$0xff]  ;;  %v242_v19 = vld [vmem:[#allocation6 + $0x30] sm:$0xff]  ;;  %v164_v23 = vld [vmem:[%s1760_s5 + $0x1] ss:$0 sm:$0xff]  ;;  %s1584_s10 = sld [smem:[#allocation2 + $0x2]] }
  0x3b   :  { %1239 = vmatprep.subr.mxu0 %v1463_v1  ;;  %1254 = vmatprep.mubr.msk.f32.mxu1 %vm1464_vm0, %v1463_v1  ;;  %v245_v16 = vld [vmem:[#allocation6 + $0x60] sm:$0xff]  ;;  %v240_v21 = vld [vmem:[#allocation6 + $0x10] sm:$0xff]  ;;  %v355_v38 = vld [vmem:[#allocation5 + $0x68] sm:$0xff]  ;;  %s1586_s11 = sld [smem:[#allocation2 + $0x82]] }
  0x3c   :  { %1240 = vmatpush3.msra.mxu0 %v81_v4  ;;  %1249 = vmatpush3.msra.mxu1 %v162_v7  ;;  %v243_v18 = vld [vmem:[#allocation6 + $0x40] sm:$0xff]  ;;  %v354_v39 = vld [vmem:[#allocation5 + $0x10] sm:$0xff]  ;;  %v435_v50 = vld [vmem:[#allocation5 + $0xc8] sm:$0xff]  ;;  %s1616_s3 = sld [smem:[#allocation2 + $0x101]] }
  0x3d   :  { %1241 = vmatprep.subr.mxu0 %v1463_v1  ;;  %1250 = vmatprep.subr.mxu1 %v1463_v1  ;;  %v241_v20 = vld [vmem:[#allocation6 + $0x20] sm:$0xff]  ;;  %v325_v24 = vstv %s1556_s26  ;;  %v434_v51 = vld [vmem:[#allocation5 + $0x70] sm:$0xff]  ;;  %v433_v52 = vld [vmem:[#allocation5 + $0x18] sm:$0xff]  ;;  %s1618_s15 = sld [smem:[#allocation2 + $0x80]] }
  0x3e   :  { %1242 = vmatpush3.msra.mxu0 %v80_v5  ;;  %1251 = vmatpush3.msra.mxu1 %v161_v8  ;;  %v239_v22 = vld [vmem:[#allocation6] sm:$0xff]  ;;  %v328_v26 = vstv %s1558_s27  ;;  %v529_v59 = vld [vmem:[#allocation5 + $0x128] sm:$0xff]  ;;  %v528_v60 = vld [vmem:[#allocation5 + $0xd0] sm:$0xff]  ;;  %s1620_s16 = sld [smem:[#allocation2 + $0x100]] }
  0x3f   :  { %1244 = vmatmul.mubr.msk.f32.vlgmr.msra.gmra.mxu0 %vm85_vm1, %v79_v6  ;;  %1257 = vmatprep.subr.mxu0 %v1463_v1  ;;  %v339_v27 = vstv %s1560_s28  ;;  %v356_v37 = vld [vmem:[#allocation5 + $0xc0] sm:$0xff]  ;;  %v527_v61 = vld [vmem:[#allocation5 + $0x78] sm:$0xff]  ;;  %s1622_s17 = sld [smem:[#allocation2 + $0x102]] }
  0x40   :  { %1273 = vmatprep.mubr.msk.f32.mxu0 %vm1464_vm0, %v1463_v1  ;;  %1252 = vmatprep.subr.mxu1 %v1463_v1  ;;  %v247_v40 = vld [vmem:[%s1760_s5 + $0x2] ss:$0 sm:$0xff]  ;;  %v332_v42 = vstv %s1584_s10  ;;  %v358_v53 = vld [vmem:[%s1760_s5 + $0x3] ss:$0 sm:$0xff]  ;;  %v437_v4 = vld [vmem:[%s1760_s5 + $0x4] ss:$0 sm:$0xff] }
  0x41   :  { %1253 = vmatpush3.msra.mxu1 %v160_v9  ;;  %1258 = vmatpush3.msra.mxu0 %v246_v15  ;;  %v347_v43 = vstv %s1586_s11  ;;  %v436_v49 = vld [vmem:[#allocation5 + $0x120] sm:$0xff] }
  0x42   :  { %1276 = vmatprep.subr.mxu1 %v1463_v1  ;;  %1259 = vmatprep.subr.mxu0 %v1463_v1  ;;  %v526_v62 = vld [vmem:[#allocation5 + $0x20] sm:$0xff]  ;;  %v517_v63 = vstv %s1616_s3 }
  0x43   :  { %1260 = vmatpush3.msra.mxu0 %v245_v16  ;;  %v336_v0 = vstv %s1618_s15 }
  0x44   :  { %1261 = vmatprep.subr.mxu0 %v1463_v1  ;;  %v514_v3 = vstv %s1620_s16 }
  0x45   :  { %1262 = vmatpush3.msra.mxu0 %v244_v17  ;;  %v521_v7 = vstv %s1622_s17 }
  0x46   :  { %1263 = vmatprep.subr.mxu0 %v1463_v1 }
  0x47   :  { %1264 = vmatpush3.msra.mxu0 %v243_v18 }
  0x48   :  { %1265 = vmatprep.subr.mxu0 %v1463_v1 }
  0x49   :  { %1266 = vmatpush3.msra.mxu0 %v242_v19 }
  0x4a   :  { %1267 = vmatprep.subr.mxu0 %v1463_v1 }
  0x4b   :  { %1268 = vmatpush3.msra.mxu0 %v241_v20 }
  0x4c   :  { %1269 = vmatprep.subr.mxu0 %v1463_v1 }
  0x4d   :  { %1270 = vmatpush3.msra.mxu0 %v240_v21  ;;  %v611_v21 = vld [vmem:[#allocation6 + $0x68] sm:$0xff] }
  0x4e   :  { %1271 = vmatprep.subr.mxu0 %v1463_v1 }
  0x4f   :  { %1272 = vmatpush3.msra.mxu0 %v239_v22  ;;  %v610_v22 = vld [vmem:[#allocation6 + $0x58] sm:$0xff] }
  0x50   :  { %1298 = vmatprep.subr.mxu0 %v1463_v1 }
  0xff   :  { %v155_v11 = vpop.f32.mrf.mxu0 }
 0x100   :  { %v156_v12 = vadd.f32 %v155_v11, %v84_v10 }
 0x101   :  { %v1245_v13 = vpop.f32.mrf.mxu0 }
 0x102   :  { %v1542_v14 = vmax.f32 %v156_v12, 0.0 }
 0x104   :  { %1255 = vmatmul.mubr.msk.f32.vlgmr.msra.gmra.mxu1 %vm85_vm1, %v1542_v14  ;;  %v326_v30 = vmul.f32 %v325_v24, %v1542_v14  ;;  %v337_v8 = vmul.f32 %v336_v0, %v1542_v14  ;;  %v612_v14 = vld [vmem:[#allocation6 + $0x78] sm:$0xff] }
 0x105   :  { %1284 = vmatprep.mubr.msk.f32.mxu1 %vm1464_vm0, %v1463_v1  ;;  %1277 = vmatpush3.msra.mxu1 %v357_v36 }
 0x106   :  { %1278 = vmatprep.subr.mxu1 %v1463_v1 }
 0x107   :  { %1279 = vmatpush3.msra.mxu1 %v356_v37 }
 0x108   :  { %1280 = vmatprep.subr.mxu1 %v1463_v1 }
 0x109   :  { %1281 = vmatpush3.msra.mxu1 %v355_v38 }
 0x10a   :  { %1282 = vmatprep.subr.mxu1 %v1463_v1 }
 0x10b   :  { %1283 = vmatpush3.msra.mxu1 %v354_v39 }
 0x10c   :  { %1287 = vmatprep.subr.mxu1 %v1463_v1 }
 0x1c4   :  { %v234_v25 = vpop.f32.mrf.mxu1 }
 0x1c5   :  { %v235_v28 = vadd.f32 %v234_v25, %v164_v23  ;;  %v609_v23 = vld [vmem:[#allocation6 + $0x48] sm:$0xff]  ;;  %v608_v25 = vld [vmem:[#allocation6 + $0x38] sm:$0xff] }
 0x1c6   :  { %v1256_v29 = vpop.f32.mrf.mxu1 }
 0x1c7   :  { %v329_v31 = vmul.f32 %v328_v26, %v235_v28  ;;  %v340_v32 = vmul.f32 %v339_v27, %v235_v28  ;;  %v238_v33 = vmax.f32 %v235_v28, 0.0  ;;  %v607_v28 = vld [vmem:[#allocation6 + $0x28] sm:$0xff]  ;;  %v606_v29 = vld [vmem:[#allocation6 + $0x18] sm:$0xff] }
 0x1c9   :  { %342 = vrot.lane.b32.xlu1 %v340_v32, %s1465_s8  ;;  %249 = vrot.lane.b32.xlu0 %v238_v33, %s1466_s9  ;;  %v330_v34 = vadd.f32 %v329_v31, %v326_v30  ;;  %v605_v30 = vld [vmem:[#allocation6 + $0x8] sm:$0xff]  ;;  %v530_v31 = vld [vmem:[%s1760_s5 + $0x5] ss:$0 sm:$0xff] }
 0x23b   :  { %v250_v35 = vpop.permute.xlu0 %249  ;;  %v343_v2 = vpop.permute.xlu1 %342 }
 0x23c   :  { %1274 = vmatmul.mubr.msk.f32.vlgmr.msra.gmra.mxu0 %vm251_vm2, %v250_v35  ;;  %v345_v13 = vadd.f32 %v343_v2, %v337_v8  ;;  %v957_v2 = vld [vmem:[#allocation5 + $0xf8] sm:$0xff] }
 0x23d   :  { %1306 = vmatprep.mubr.msk.f32.mxu0 %vm1464_vm0, %v1463_v1  ;;  %1299 = vmatpush3.msra.mxu0 %v529_v59  ;;  %v954_v8 = vld [vmem:[#allocation5 + $0x98] sm:$0xff] }
 0x23e   :  { %1300 = vmatprep.subr.mxu0 %v1463_v1 }
 0x23f   :  { %1301 = vmatpush3.msra.mxu0 %v528_v60  ;;  %v959_v60 = vld [vmem:[#allocation5 + $0x150] sm:$0xff] }
 0x240   :  { %1302 = vmatprep.subr.mxu0 %v1463_v1 }
 0x241   :  { %1303 = vmatpush3.msra.mxu0 %v527_v61  ;;  %v876_v61 = vld [vmem:[#allocation5 + $0x140] sm:$0xff] }
 0x242   :  { %1304 = vmatprep.subr.mxu0 %v1463_v1 }
 0x243   :  { %1305 = vmatpush3.msra.mxu0 %v526_v62  ;;  %v958_v62 = vld [vmem:[#allocation5 + $0x148] sm:$0xff] }
 0x244   :  { %1309 = vmatprep.subr.mxu0 %v1463_v1 }
 0x2fc   :  { %v320_v41 = vpop.f32.mrf.mxu0 }
 0x2fd   :  { %v321_v44 = vadd.f32 %v320_v41, %v247_v40  ;;  %v710_v41 = vld [vmem:[#allocation5 + $0x130] sm:$0xff] }
 0x2fe   :  { %v1275_v45 = vpop.f32.mrf.mxu0 }
 0x2ff   :  { %v333_v46 = vmul.f32 %v332_v42, %v321_v44  ;;  %v348_v47 = vmul.f32 %v347_v43, %v321_v44  ;;  %v613_v44 = vld [vmem:[%s1760_s5 + $0x6] ss:$0 sm:$0xff] }
 0x301   :  { %v334_v48 = vadd.f32 %v333_v46, %v330_v34  ;;  %350 = vrot.lane.b32.xlu1 %v348_v47, %s1465_s8 }
 0x303   :  { %1285 = vmatmul.mubr.msk.f32.vlgmr.msra.gmra.mxu1 %vm85_vm1, %v334_v48  ;;  %v515_v9 = vmul.f32 %v514_v3, %v334_v48 }
 0x304   :  { %1295 = vmatprep.mubr.msk.f32.mxu1 %vm1464_vm0, %v1463_v1  ;;  %1288 = vmatpush3.msra.mxu1 %v436_v49 }
 0x305   :  { %1289 = vmatprep.subr.mxu1 %v1463_v1 }
 0x306   :  { %1290 = vmatpush3.msra.mxu1 %v435_v50  ;;  %v789_v50 = vld [vmem:[#allocation5 + $0x138] sm:$0xff] }
 0x307   :  { %1291 = vmatprep.subr.mxu1 %v1463_v1 }
 0x308   :  { %1292 = vmatpush3.msra.mxu1 %v434_v51  ;;  %v788_v51 = vld [vmem:[#allocation5 + $0xe0] sm:$0xff] }
 0x309   :  { %1293 = vmatprep.subr.mxu1 %v1463_v1 }
 0x30a   :  { %1294 = vmatpush3.msra.mxu1 %v433_v52  ;;  %v787_v52 = vld [vmem:[#allocation5 + $0x88] sm:$0xff] }
 0x30b   :  { %1350 = vmatprep.subr.mxu1 %v1463_v1 }
 0x373   :  { %v351_v11 = vpop.permute.xlu1 %350 }
 0x374   :  { %v353_v17 = vadd.f32 %v351_v11, %v345_v13  ;;  %v952_v11 = vld [vmem:[#allocation5 + $0x40] sm:$0xff] }
 0x3c3   :  { %v428_v54 = vpop.f32.mrf.mxu1 }
 0x3c4   :  { %v429_v55 = vadd.f32 %v428_v54, %v358_v53  ;;  %v786_v53 = vld [vmem:[#allocation5 + $0x30] sm:$0xff] }
 0x3c5   :  { %v1286_v56 = vpop.f32.mrf.mxu1 }
 0x3c6   :  { %v432_v57 = vmax.f32 %v429_v55, 0.0  ;;  %v518_v5 = vmul.f32 %v517_v63, %v429_v55 }
 0x3c8   :  { %439 = vrot.lane.b32.xlu0 %v432_v57, %s1465_s8  ;;  %v519_v15 = vadd.f32 %v518_v5, %v515_v9  ;;  %v956_v5 = vld [vmem:[#allocation5 + $0xf0] sm:$0xff]  ;;  %v953_v9 = vld [vmem:[#allocation5 + $0x48] sm:$0xff] }
 0x43a   :  { %v440_v58 = vpop.permute.xlu0 %439 }
 0x43b   :  { %1296 = vmatmul.mubr.msk.f32.vlgmr.msra.gmra.mxu1 %vm85_vm1, %v440_v58 }
 0x43c   :  { %1358 = vmatprep.mubr.msk.f32.mxu1 %vm1464_vm0, %v1463_v1  ;;  %1351 = vmatpush3.msra.mxu1 %v876_v61 }
 0x43d   :  { %1352 = vmatprep.subr.mxu1 %v1463_v1 }
 0x4fb   :  { %v509_v6 = vpop.f32.mrf.mxu1 }
 0x4fc   :  { %v510_v10 = vadd.f32 %v509_v6, %v437_v4  ;;  %v875_v4 = vld [vmem:[#allocation5 + $0xe8] sm:$0xff]  ;;  %v874_v6 = vld [vmem:[#allocation5 + $0x90] sm:$0xff] }
 0x4fd   :  { %v1297_v12 = vpop.f32.mrf.mxu1  ;;  %1353 = vmatpush3.msra.mxu1 %v875_v4 }
 0x4fe   :  { %v522_v16 = vmul.f32 %v521_v7, %v510_v10  ;;  %1354 = vmatprep.subr.mxu1 %v1463_v1  ;;  %v873_v10 = vld [vmem:[#allocation5 + $0x38] sm:$0xff]  ;;  %v790_v12 = vld [vmem:[%s1760_s5 + $0x10] ss:$0 sm:$0xff] }
 0x4ff   :  { %1355 = vmatpush3.msra.mxu1 %v874_v6 }
 0x500   :  { %v523_v18 = vadd.f32 %v522_v16, %v519_v15  ;;  %1356 = vmatprep.subr.mxu1 %v1463_v1 }
 0x501   :  { %1357 = vmatpush3.msra.mxu1 %v873_v10 }
 0x502   :  { %v524_v19 = vadd.f32 %v523_v18, %v353_v17  ;;  %1074 = vmatprep.subr.mxu1 %v1463_v1 }
 0x504   :  { %v1640_v20 = vadd.f32 %v524_v19, %v334_v48 }
 0x506   :  { %1307 = vmatmul.mubr.msk.f32.vlgmr.msra.gmra.mxu0 %vm85_vm1, %v1640_v20  ;;  %v689_v37 = vmul.f32 %v1640_v20, %v325_v24  ;;  %v708_v24 = vld [vmem:[#allocation5 + $0x80] sm:$0xff]  ;;  %v694_v17 = vmul.f32 %v1640_v20, %v336_v0  ;;  %v1060_v0 = vld [vmem:[#allocation8 + $0x70] sm:$0xff] }
 0x507   :  { %1325 = vmatprep.mubr.msk.f32.mxu0 %vm1464_vm0, %v1463_v1  ;;  %1310 = vmatpush3.msra.mxu0 %v612_v14  ;;  %v1058_v20 = vld [vmem:[#allocation8 + $0x60] sm:$0xff] }
 0x508   :  { %1311 = vmatprep.subr.mxu0 %v1463_v1 }
 0x509   :  { %1312 = vmatpush3.msra.mxu0 %v611_v21 }
 0x50a   :  { %1313 = vmatprep.subr.mxu0 %v1463_v1 }
 0x50b   :  { %1314 = vmatpush3.msra.mxu0 %v610_v22 }
 0x50c   :  { %1315 = vmatprep.subr.mxu0 %v1463_v1 }
 0x50d   :  { %1316 = vmatpush3.msra.mxu0 %v609_v23 }
 0x50e   :  { %1317 = vmatprep.subr.mxu0 %v1463_v1 }
 0x50f   :  { %1318 = vmatpush3.msra.mxu0 %v608_v25 }
 0x510   :  { %1319 = vmatprep.subr.mxu0 %v1463_v1 }
 0x511   :  { %1320 = vmatpush3.msra.mxu0 %v607_v28 }
 0x512   :  { %1321 = vmatprep.subr.mxu0 %v1463_v1 }
 0x513   :  { %1322 = vmatpush3.msra.mxu0 %v606_v29 }
 0x514   :  { %1323 = vmatprep.subr.mxu0 %v1463_v1 }
 0x515   :  { %1324 = vmatpush3.msra.mxu0 %v605_v30 }
 0x516   :  { %1328 = vmatprep.subr.mxu0 %v1463_v1 }
 0x5c6   :  { %v600_v32 = vpop.f32.mrf.mxu0 }
 0x5c7   :  { %v601_v33 = vadd.f32 %v600_v32, %v530_v31  ;;  %v1061_v31 = vld [vmem:[#allocation8 + $0x78] sm:$0xff]  ;;  %v1056_v32 = vld [vmem:[#allocation8 + $0x50] sm:$0xff] }
 0x5c8   :  { %v1308_v34 = vpop.f32.mrf.mxu0 }
 0x5c9   :  { %v690_v35 = vmul.f32 %v601_v33, %v328_v26  ;;  %v604_v36 = vmax.f32 %v601_v33, 0.0  ;;  %v695_v39 = vmul.f32 %v601_v33, %v339_v27  ;;  %v709_v26 = vld [vmem:[#allocation5 + $0xd8] sm:$0xff]  ;;  %v707_v27 = vld [vmem:[#allocation5 + $0x28] sm:$0xff]  ;;  %v1054_v34 = vld [vmem:[#allocation8 + $0x40] sm:$0xff] }
 0x5ca   :  { %v1055_v33 = vld [vmem:[#allocation8 + $0x48] sm:$0xff] }
 0x5cb   :  { %615 = vrot.lane.b32.xlu0 %v604_v36, %s1466_s9  ;;  %v691_v38 = vadd.f32 %v690_v35, %v689_v37  ;;  %v1053_v35 = vld [vmem:[#allocation8 + $0x38] sm:$0xff]  ;;  %v1052_v36 = vld [vmem:[#allocation8 + $0x30] sm:$0xff]  ;;  %v1051_v37 = vld [vmem:[#allocation8 + $0x28] sm:$0xff] }
 0x5cf   :  { %697 = vrot.lane.b32.xlu0 %v695_v39, %s1465_s8  ;;  %v1049_v39 = vld [vmem:[#allocation8 + $0x18] sm:$0xff] }
 0x63d   :  { %v616_v40 = vpop.permute.xlu0 %615 }
 0x63e   :  { %1326 = vmatmul.mubr.msk.f32.vlgmr.msra.gmra.mxu0 %vm251_vm2, %v616_v40  ;;  %v1048_v40 = vld [vmem:[#allocation8 + $0x10] sm:$0xff] }
 0x63f   :  { %1336 = vmatprep.mubr.msk.f32.mxu0 %vm1464_vm0, %v1463_v1  ;;  %1329 = vmatpush3.msra.mxu0 %v710_v41  ;;  %v1047_v41 = vld [vmem:[#allocation8 + $0x8] sm:$0xff] }
 0x640   :  { %1330 = vmatprep.subr.mxu0 %v1463_v1 }
 0x641   :  { %1331 = vmatpush3.msra.mxu0 %v709_v26  ;;  %v698_v15 = vpop.permute.xlu0 %697  ;;  %v1046_v26 = vld [vmem:[#allocation8] sm:$0xff] }
 0x642   :  { %1332 = vmatprep.subr.mxu0 %v1463_v1  ;;  %v700_v22 = vadd.f32 %v698_v15, %v694_v17 }
 0x643   :  { %1333 = vmatpush3.msra.mxu0 %v708_v24  ;;  %v1069_v24 = vld [vmem:[#allocation8 + $0xb8] sm:$0xff] }
 0x644   :  { %1334 = vmatprep.subr.mxu0 %v1463_v1 }
 0x645   :  { %1335 = vmatpush3.msra.mxu0 %v707_v27  ;;  %v1068_v27 = vld [vmem:[#allocation8 + $0xb0] sm:$0xff] }
 0x646   :  { %1339 = vmatprep.subr.mxu0 %v1463_v1 }
 0x6fe   :  { %v685_v45 = vpop.f32.mrf.mxu0 }
 0x6ff   :  { %v686_v46 = vadd.f32 %v685_v45, %v613_v44  ;;  %v1067_v44 = vld [vmem:[#allocation8 + $0xa8] sm:$0xff]  ;;  %v1066_v45 = vld [vmem:[#allocation8 + $0xa0] sm:$0xff] }
 0x700   :  { %v1327_v47 = vpop.f32.mrf.mxu0 }
 0x701   :  { %v692_v48 = vmul.f32 %v686_v46, %v332_v42  ;;  %v711_v42 = vld [vmem:[%s1760_s5 + $0x7] ss:$0 sm:$0xff]  ;;  %v701_v58 = vmul.f32 %v686_v46, %v347_v43  ;;  %v1065_v46 = vld [vmem:[#allocation8 + $0x98] sm:$0xff]  ;;  %v1064_v47 = vld [vmem:[#allocation8 + $0x90] sm:$0xff] }
 0x702   :  { %v955_v43 = vld [vmem:[#allocation5 + $0xa0] sm:$0xff] }
 0x703   :  { %v1678_v49 = vadd.f32 %v692_v48, %v691_v38  ;;  %v1050_v38 = vld [vmem:[#allocation8 + $0x20] sm:$0xff]  ;;  %v1063_v48 = vld [vmem:[#allocation8 + $0x88] sm:$0xff] }
 0x705   :  { %1337 = vmatmul.mubr.msk.f32.vlgmr.msra.gmra.mxu0 %vm85_vm1, %v1678_v49  ;;  %v866_v18 = vmul.f32 %v1678_v49, %v514_v3  ;;  %v1059_v3 = vld [vmem:[#allocation8 + $0x68] sm:$0xff] }
 0x706   :  { %1347 = vmatprep.mubr.msk.f32.mxu0 %vm1464_vm0, %v1463_v1  ;;  %1340 = vmatpush3.msra.mxu0 %v789_v50  ;;  %v963_v50 = vlaneseq }
 0x707   :  { %1341 = vmatprep.subr.mxu0 %v1463_v1 }
 0x708   :  { %1342 = vmatpush3.msra.mxu0 %v788_v51  ;;  %v964_v51 = vshrl.u32 %v963_v50, 7 }
 0x709   :  { %1343 = vmatprep.subr.mxu0 %v1463_v1 }
 0x70a   :  { %1344 = vmatpush3.msra.mxu0 %v787_v52  ;;  %v965_v52 = vsub.s32 0, %v964_v51 }
 0x70b   :  { %1345 = vmatprep.subr.mxu0 %v1463_v1 }
 0x70c   :  { %1346 = vmatpush3.msra.mxu0 %v786_v53  ;;  %v1174_v53 = vld [vmem:[%s1760_s5 + $0x12] ss:$8 sm:$0x3] }
 0x70d   :  { %997 = vmatprep.subr.mxu0 %v959_v60 }
 0x7c5   :  { %v781_v54 = vpop.f32.mrf.mxu0 }
 0x7c6   :  { %v782_v55 = vadd.f32 %v781_v54, %v711_v42  ;;  %v969_v42 = vsub.s32 1, %v964_v51  ;;  %v877_v54 = vld [vmem:[%s1760_s5 + $0x11] ss:$0 sm:$0xff] }
 0x7c7   :  { %v1338_v56 = vpop.f32.mrf.mxu0 }
 0x7c8   :  { %v785_v57 = vmax.f32 %v782_v55, 0.0  ;;  %v867_v13 = vmul.f32 %v782_v55, %v517_v63  ;;  %v966_v55 = vrot.slane %v1174_v53, %v965_v52  ;;  %v970_v56 = vrot.slane %v1174_v53, %v969_v42 }
 0x7ca   :  { %792 = vrot.lane.b32.xlu1 %v785_v57, %s1465_s8  ;;  %v868_v23 = vadd.f32 %v867_v13, %v866_v18 }
 0x7ce   :  { %703 = vrot.lane.b32.xlu1 %v701_v58, %s1465_s8 }
 0x83c   :  { %v793_v59 = vpop.permute.xlu1 %792 }
 0x83d   :  { %1348 = vmatmul.mubr.msk.f32.vlgmr.msra.gmra.mxu0 %vm85_vm1, %v793_v59 }
 0x83e   :  { %1037 = vmatprep.mubr.f32.mxu0 %v1463_v1  ;;  %998 = vmatpush1.msra.mxu0 %v958_v62 }
 0x83f   :  { %999 = vmatprep.subr.mxu0 %v957_v2 }
 0x840   :  { %1000 = vmatpush1.msra.mxu0 %v956_v5  ;;  %v704_v14 = vpop.permute.xlu1 %703  ;;  %v1070_v5 = vld [vmem:[%s1760_s5 + $0x13] ss:$0 sm:$0xff] }
 0x841   :  { %1001 = vmatprep.subr.mxu0 %v955_v43  ;;  %v706_v28 = vadd.f32 %v704_v14, %v700_v22 }
 0x842   :  { %1002 = vmatpush1.msra.mxu0 %v954_v8 }
 0x843   :  { %1003 = vmatprep.subr.mxu0 %v953_v9 }
 0x844   :  { %1004 = vmatpush1.msra.mxu0 %v952_v11 }
 0x8fd   :  { %v862_v16 = vpop.f32.mrf.mxu0 }
 0x8fe   :  { %v863_v19 = vadd.f32 %v862_v16, %v790_v12 }
 0x8ff   :  { %v1349_v21 = vpop.f32.mrf.mxu0 }
 0x900   :  { %v869_v25 = vmul.f32 %v863_v19, %v521_v7  ;;  %v1057_v7 = vld [vmem:[#allocation8 + $0x58] sm:$0xff] }
 0x902   :  { %v870_v29 = vadd.f32 %v869_v25, %v868_v23 }
 0x904   :  { %v871_v30 = vadd.f32 %v870_v29, %v706_v28 }
 0x906   :  { %v872_v63 = vadd.f32 %v871_v30, %v1678_v49  ;;  %v1062_v49 = vld [vmem:[#allocation8 + $0x80] sm:$0xff] }
 0x908   :  { %1359 = vmatmul.mubr.msk.f32.vlgmr.msra.gmra.mxu1 %vm85_vm1, %v872_v63  ;;  %1175 = vmatmul.mubr.msk.f32.vlgmr.msra.gmra.mxu0 %vm85_vm1, %v872_v63 }
 0x909   :  { %1075 = vmatpush1.msra.mxu1 %v1061_v31 }
 0x90a   :  { %1076 = vmatprep.subr.mxu1 %v1463_v1 }
 0x90b   :  { %1077 = vmatpush1.msra.mxu1 %v1060_v0 }
 0x90c   :  { %1078 = vmatprep.subr.mxu1 %v1463_v1 }
 0x90d   :  { %1079 = vmatpush1.msra.mxu1 %v1059_v3 }
 0x90e   :  { %1080 = vmatprep.subr.mxu1 %v1463_v1 }
 0x90f   :  { %1081 = vmatpush1.msra.mxu1 %v1058_v20 }
 0x910   :  { %1082 = vmatprep.subr.mxu1 %v1463_v1 }
 0x911   :  { %1083 = vmatpush1.msra.mxu1 %v1057_v7 }
 0x912   :  { %1084 = vmatprep.subr.mxu1 %v1463_v1 }
 0x913   :  { %1085 = vmatpush1.msra.mxu1 %v1056_v32 }
 0x914   :  { %1086 = vmatprep.subr.mxu1 %v1463_v1 }
 0x915   :  { %1087 = vmatpush1.msra.mxu1 %v1055_v33 }
 0x916   :  { %1088 = vmatprep.subr.mxu1 %v1463_v1 }
 0x917   :  { %1089 = vmatpush1.msra.mxu1 %v1054_v34 }
 0x918   :  { %1090 = vmatprep.subr.mxu1 %v1463_v1 }
 0x919   :  { %1091 = vmatpush1.msra.mxu1 %v1053_v35 }
 0x91a   :  { %1092 = vmatprep.subr.mxu1 %v1463_v1 }
 0x91b   :  { %1093 = vmatpush1.msra.mxu1 %v1052_v36 }
 0x91c   :  { %1094 = vmatprep.subr.mxu1 %v1463_v1 }
 0x91d   :  { %1095 = vmatpush1.msra.mxu1 %v1051_v37 }
 0x91e   :  { %1096 = vmatprep.subr.mxu1 %v1463_v1 }
 0x91f   :  { %1097 = vmatpush1.msra.mxu1 %v1050_v38 }
 0x920   :  { %1098 = vmatprep.subr.mxu1 %v1463_v1 }
 0x921   :  { %1099 = vmatpush1.msra.mxu1 %v1049_v39 }
 0x922   :  { %1100 = vmatprep.subr.mxu1 %v1463_v1 }
 0x923   :  { %1101 = vmatpush1.msra.mxu1 %v1048_v40 }
 0x924   :  { %1102 = vmatprep.subr.mxu1 %v1463_v1 }
 0x925   :  { %1103 = vmatpush1.msra.mxu1 %v1047_v41 }
 0x926   :  { %1104 = vmatprep.subr.mxu1 %v1463_v1 }
 0x927   :  { %1105 = vmatpush1.msra.mxu1 %v1046_v26 }
 0x928   :  { %1122 = vmatprep.subr.mxu1 %v1463_v1 }
 0x929   :  { %1123 = vmatpush2.msra.mxu1 %v1069_v24 }
 0x92a   :  { %1124 = vmatprep.subr.mxu1 %v1463_v1 }
 0x92b   :  { %1125 = vmatpush2.msra.mxu1 %v1068_v27 }
 0x92c   :  { %1126 = vmatprep.subr.mxu1 %v1463_v1 }
 0x92d   :  { %1127 = vmatpush2.msra.mxu1 %v1067_v44 }
 0x92e   :  { %1128 = vmatprep.subr.mxu1 %v1463_v1 }
 0x92f   :  { %1129 = vmatpush2.msra.mxu1 %v1066_v45 }
 0x930   :  { %1130 = vmatprep.subr.mxu1 %v1463_v1 }
 0x931   :  { %1131 = vmatpush2.msra.mxu1 %v1065_v46 }
 0x932   :  { %1132 = vmatprep.subr.mxu1 %v1463_v1 }
 0x933   :  { %1133 = vmatpush2.msra.mxu1 %v1064_v47 }
 0x934   :  { %1134 = vmatprep.subr.mxu1 %v1463_v1 }
 0x935   :  { %1135 = vmatpush2.msra.mxu1 %v1063_v48 }
 0x936   :  { %1136 = vmatprep.subr.mxu1 %v1463_v1 }
 0x937   :  { %1137 = vmatpush2.msra.mxu1 %v1062_v49 }
 0x9c8   :  { %v947_v57 = vpop.f32.mrf.mxu1  ;;  %v1039_v58 = vpop.f32.mrf.mxu0 }
 0x9c9   :  { %v948_v59 = vadd.f32 %v947_v57, %v877_v54  ;;  %v1040_v60 = vadd.f32 %v1039_v58, %v966_v55 }
 0x9ca   :  { %v1360_v1 = vpop.f32.mrf.mxu1  ;;  %v1041_v61 = vpop.f32.mrf.mxu0 }
 0x9cb   :  { %951 = vst [vmem:[%s1761_s6] sm:$0xff] %v948_v59  ;;  %v1042_v62 = vadd.f32 %v1041_v61, %v970_v56  ;;  %v1044_v4 = vmax.f32 %v1040_v60, 0.0 }
 0x9cd   :  { %v1045_v2 = vmax.f32 %v1042_v62, 0.0 }
 0x9cf   :  { %1176 = vmatprep.mubr.msk.f32.mxu1 %vm251_vm2, %v1045_v2 }
 0x9d0   :  { %1139 = vmatmul.mubr.f32.vlgmr.msra.gmra.mxu1 %v1044_v4 }
 0xa90   :  { %v1140_v43 = vpop.f32.mrf.mxu1 }
 0xa91   :  { %v1141_v6 = vadd.f32 %v1140_v43, %v1070_v5 }
 0xa92   :  { %v1142_v8 = vpop.f32.mrf.mxu1 }
 0xa93   :  { %1144 = vst [vmem:[%s1762_s7] sm:$0xff] %v1141_v6 }
 0xa94   :  { %1153 = vsyncpa [#allocation3], 1 }
 0xa95   :  { %1154 = vsyncpa [#allocation7], 1 }
 0xa96   :  { %1155 = vsyncpa [#allocation4], 1 }

</bundles_post_ra>
